<compile_context>
chip_gen: v5e
topology: v5e:2x2
jax: 0.10.0
libtpu: 0.0.40
codegen_flags: <defaults>
</compile_context>

<pallas_src>
import math

import jax
import jax.numpy as jnp
from jax.experimental import pallas as pl
from jax.experimental.pallas import tpu as pltpu

_LANE = 128
_SUBLANE = 8


def _round_up(x, m):
    return (x + m - 1) // m * m


def _cdiv(a, b):
    return (a + b - 1) // b


def _tpu_config():
    """(num_tensorcores, vmem_capacity_bytes) with conservative fallbacks."""
    num_cores, vmem = 2, 64 * 1024 * 1024  # conservative: multi-core, small VMEM
    try:
        info = pltpu.get_tpu_info()
        vmem = int(getattr(info, "vmem_capacity_bytes", vmem))
        found = None
        for name in ("num_cores", "num_tensorcores", "tensorcores_per_chip",
                     "core_count"):
            v = getattr(info, name, None)
            if v:
                found = int(v)
                break
        if found is not None:
            num_cores = found
        else:
            # v7x: 64 MiB VMEM per TC, 2 TCs/chip; v5e/v6e: 128 MiB, 1 TC.
            num_cores = 2 if vmem <= 64 * 1024 * 1024 else 1
    except Exception:
        pass  # off-device / older runtime: keep conservative defaults
    return num_cores, vmem


def _choose_tile_rows(M, K, PE, in_itemsize, out_itemsize, budget_bytes,
                      num_cores, sublane, cap):
    """Largest multiple-of-`sublane` row tile that fits the VMEM budget.

    Footprint model (accounts for lane/sublane padding, per perf review):
      x tile   (tm, K)  -> K lane-pads to 128             (double-buffered)
      out tile (tm, PE) -> PE lane-pads to mult of 128     (double-buffered)
      weight   (K, PE)  -> K sublane-pads (8 f32 / 16 bf16) (double-buffered, tiny)
      bias     (1, PE)  -> 8 sublanes f32                   (double-buffered, tiny)
    """
    k_lanes = _round_up(K, _LANE)
    pe_lanes = _round_up(PE, _LANE)
    per_row = 2 * (k_lanes * in_itemsize + pe_lanes * out_itemsize)
    sub_pack_in = _SUBLANE * max(1, 4 // max(in_itemsize, 1))
    resident = 2 * (_round_up(K, sub_pack_in) * pe_lanes * in_itemsize
                    + _SUBLANE * pe_lanes * 4)
    avail = max(budget_bytes - resident, per_row * sublane)
    tm = (avail // per_row) // sublane * sublane
    tm = max(sublane, min(tm, cap))

    if num_cores > 1 and M > 2 * num_cores * sublane:
        # v7x: give each TensorCore >= 2 programs and keep the program count a
        # multiple of the core count so the row axis shards without a tail
        # tile leaving one core idle.
        steps = _round_up(max(_cdiv(M, tm), 2 * num_cores), num_cores)
        tm = min(tm, max(sublane, _round_up(_cdiv(M, steps), sublane)))
    return tm


def _linear_kernel(x_ref, w_ref, b_ref, o_ref):
    # x_ref: (tm, K)   input-row tile (f32 or bf16)
    # w_ref: (K, PE)   resident pre-transposed weight
    # b_ref: (1, PE)   resident bias row (f32)
    # o_ref: (tm, PE)  output tile (out_dtype; cast here, accumulate in f32)
    acc = jnp.dot(x_ref[...], w_ref[...], preferred_element_type=jnp.float32)
    o_ref[...] = (acc + b_ref[...]).astype(o_ref.dtype)


def tactile_patch_embed_no_history(
    tactile,
    weight_t,
    bias,
    *,
    num_tactile_patches,
    embed_dim,
    out_dtype=None,
    compute_dtype=None,
    xla_fallback_out_bytes=2 * 1024 * 1024,
):
    """Pallas implementation of TactilePatchEmbedNoHistory.forward.

    Args:
      tactile:  (B, S, 1, tactile_dim)
      weight_t: (tactile_dim, P*E)  (nn.Linear weight, transposed)
      bias:     (P*E,)
      out_dtype: output dtype (default: tactile.dtype).  bf16 halves the
        dominant HBM output-write traffic; accumulation stays f32.
      compute_dtype: optional dtype for x/weight DMA traffic (opt-in,
        not bit-exact with the f32 PyTorch reference).
      xla_fallback_out_bytes: if the output slab is smaller than this, let XLA
        emit the fused matmul+bias instead of paying pallas_call overhead.
    Returns:
      (B, S, P, E) array with dtype `out_dtype`.
    """
    B, S, one, K = tactile.shape
    assert one == 1
    P, E = num_tactile_patches, embed_dim
    PE = P * E
    assert weight_t.shape == (K, PE)
    assert bias.shape == (PE,)

    out_dtype = tactile.dtype if out_dtype is None else jnp.dtype(out_dtype)
    out_itemsize = jnp.dtype(out_dtype).itemsize

    # squeeze(2) + view(B*S, -1)
    x2d = tactile.reshape(B * S, K)
    M = B * S

    if compute_dtype is not None:
        x2d = x2d.astype(compute_dtype)
        weight_t = weight_t.astype(compute_dtype)
    in_itemsize = jnp.dtype(x2d.dtype).itemsize

    bias_f32 = bias.astype(jnp.float32)

    # Tiny outputs: launch overhead dominates and XLA can fuse the matmul+bias
    # into neighbouring transformer ops for free.
    if M * PE * out_itemsize <= xla_fallback_out_bytes:
        out2d = (
            jnp.dot(x2d, weight_t, preferred_element_type=jnp.float32) + bias_f32
        ).astype(out_dtype)
        return out2d.reshape(B, S, P, E)

    num_cores, vmem_phys = _tpu_config()
    large_vmem = vmem_phys >= 128 * 1024 * 1024
    vmem_limit = (64 if large_vmem else 32) * 1024 * 1024
    tile_budget = vmem_limit - 8 * 1024 * 1024        # headroom for compiler scratch
    tm_cap = 4096 if large_vmem else 2048

    # bf16/fp8 outputs pack along sublanes: keep row tiles a multiple of the
    # packed sublane count so output stores stay unmasked full-vreg writes.
    sublane = _SUBLANE * max(1, 4 // max(out_itemsize, 1))

    tm = _choose_tile_rows(M, K, PE, in_itemsize, out_itemsize, tile_budget,
                           num_cores, sublane, tm_cap)
    if tm >= M:
        tm = M  # single block; block dim == full array dim is always legal
    grid = (pl.cdiv(M, tm),)

    bias2d = bias_f32.reshape(1, PE)

    cost = pl.CostEstimate(
        flops=2 * M * K * PE,
        transcendentals=0,
        bytes_accessed=in_itemsize * (M * K + K * PE)
        + 4 * PE
        + out_itemsize * M * PE,
    )
    compiler_params = pltpu.CompilerParams(
        dimension_semantics=("parallel",),
        vmem_limit_bytes=vmem_limit,
    )

    grid_spec = pltpu.PrefetchScalarGridSpec(
        num_scalar_prefetch=0,
        grid=grid,
        in_specs=[
            pl.BlockSpec((tm, K), lambda i: (i, 0)),     # row tile (ragged last ok)
            pl.BlockSpec((K, PE), lambda i: (0, 0)),     # resident weight
            pl.BlockSpec((1, PE), lambda i: (0, 0)),     # resident bias
        ],
        out_specs=pl.BlockSpec((tm, PE), lambda i: (i, 0)),
    )
    out2d = pl.pallas_call(
        _linear_kernel,
        out_shape=jax.ShapeDtypeStruct((M, PE), out_dtype),
        grid_spec=grid_spec,
        compiler_params=compiler_params,
        cost_estimate=cost,
    )(x2d, weight_t, bias2d)

    # .view(B, S, P, E)
    return out2d.reshape(B, S, P, E)


def init_params(key, tactile_dim, num_tactile_patches, embed_dim):
    """nn.Linear default init U(-1/sqrt(fan_in), 1/sqrt(fan_in)); weight stored transposed."""
    PE = num_tactile_patches * embed_dim
    kw, kb = jax.random.split(key)
    bound = 1.0 / math.sqrt(tactile_dim)
    weight_t = jax.random.uniform(kw, (tactile_dim, PE), jnp.float32, -bound, bound)
    bias = jax.random.uniform(kb, (PE,), jnp.float32, -bound, bound)
    return weight_t, bias


def _reference(tactile, weight_t, bias, P, E):
    B, S, _, K = tactile.shape
    x = tactile.reshape(B * S, K).astype(jnp.float32)
    y = x @ weight_t.astype(jnp.float32) + bias.astype(jnp.float32)
    return y.reshape(B, S, P, E)


if __name__ == "__main__":
    root = jax.random.PRNGKey(0)
    k1, k2, k3, k4, k5, k6 = jax.random.split(root, 6)

    # Config 1: B=2, S=8 (M=16), tactile_dim=12, 4 patches x embed 32 (P*E=128).
    # Force the Pallas path (fallback threshold 0) to exercise the kernel.
    B, S, K, P, E = 2, 8, 12, 4, 32
    tac1 = jax.random.normal(k1, (B, S, 1, K), jnp.float32)
    w1, b1 = init_params(k2, K, P, E)
    out1 = jax.block_until_ready(
        tactile_patch_embed_no_history(
            tac1, w1, b1, num_tactile_patches=P, embed_dim=E,
            xla_fallback_out_bytes=0)
    )
    ref1 = _reference(tac1, w1, b1, P, E)
    assert out1.shape == (B, S, P, E)
    assert jnp.allclose(out1, ref1, atol=1e-5, rtol=1e-5)

    # Config 1b: same inputs through the default fallback path (tiny output
    # -> fused XLA matmul+bias, bit-exact with the reference).
    out1b = jax.block_until_ready(
        tactile_patch_embed_no_history(
            tac1, w1, b1, num_tactile_patches=P, embed_dim=E)
    )
    assert jnp.allclose(out1b, ref1, atol=1e-5, rtol=1e-5)

    # Config 2: ragged row count (M=15) and non-lane-aligned P*E=96.
    # No padding/slicing: single ragged block + masked (96/128-lane) stores.
    B, S, K, P, E = 3, 5, 12, 2, 48
    tac2 = jax.random.normal(k3, (B, S, 1, K), jnp.float32)
    w2, b2 = init_params(k4, K, P, E)
    out2 = jax.block_until_ready(
        tactile_patch_embed_no_history(
            tac2, w2, b2, num_tactile_patches=P, embed_dim=E,
            xla_fallback_out_bytes=0)
    )
    ref2 = _reference(tac2, w2, b2, P, E)
    assert out2.shape == (B, S, P, E)
    assert jnp.allclose(out2, ref2, atol=1e-5, rtol=1e-5)

    # Config 3: module-default embed_dim=384, 2 tactile patches (P*E=768),
    # M=128 rows; exercises multi-step grid on multi-TC chips and a single
    # big tile on single-TC chips.
    B, S, K, P, E = 4, 32, 12, 2, 384
    tac3 = jax.random.normal(k5, (B, S, 1, K), jnp.float32)
    w3, b3 = init_params(k6, K, P, E)
    out3 = jax.block_until_ready(
        tactile_patch_embed_no_history(
            tac3, w3, b3, num_tactile_patches=P, embed_dim=E,
            xla_fallback_out_bytes=0)
    )
    ref3 = _reference(tac3, w3, b3, P, E)
    assert out3.shape == (B, S, P, E)
    assert jnp.allclose(out3, ref3, atol=1e-4, rtol=1e-4)

    # Config 3b: bf16 output (halves the dominant HBM write), f32 accumulation.
    out3b = jax.block_until_ready(
        tactile_patch_embed_no_history(
            tac3, w3, b3, num_tactile_patches=P, embed_dim=E,
            out_dtype=jnp.bfloat16, xla_fallback_out_bytes=0)
    )
    assert out3b.dtype == jnp.bfloat16
    assert jnp.allclose(out3b.astype(jnp.float32), ref3, atol=2e-2, rtol=2e-2)

    print("KERNEL_OK")
</pallas_src>

<mosaic_0001>
module attributes {stable_mosaic.version = 11 : i64} {
  func.func @_linear_kernel(%arg0: i32, %arg1: memref<16x12xf32, #tpu.memory_space<vmem>>, %arg2: memref<12x128xf32, #tpu.memory_space<vmem>>, %arg3: memref<1x128xf32, #tpu.memory_space<vmem>>, %arg4: memref<16x128xf32, #tpu.memory_space<vmem>>) attributes {dimension_semantics = [#tpu.dimension_semantics<parallel>], iteration_bounds = array<i64: 1>, scalar_prefetch = 0 : i64, scratch_operands = 0 : i64, tpu.core_type = #tpu.core_type<tc>, window_params = [{transform_indices = @transform_0, window_bounds = array<i64: 16, 12>}, {pipeline_mode = #tpu.pipeline_mode<synchronous>, transform_indices = @transform_1, window_bounds = array<i64: 12, 128>}, {pipeline_mode = #tpu.pipeline_mode<synchronous>, transform_indices = @transform_2, window_bounds = array<i64: 1, 128>}, {transform_indices = @transform_3, window_bounds = array<i64: 16, 128>}]} {
    %c0 = arith.constant 0 : index
    %c0_0 = arith.constant 0 : index
    %0 = vector.load %arg1[%c0, %c0_0] : memref<16x12xf32, #tpu.memory_space<vmem>>, vector<16x12xf32>
    %c0_1 = arith.constant 0 : index
    %c0_2 = arith.constant 0 : index
    %1 = vector.load %arg2[%c0_1, %c0_2] : memref<12x128xf32, #tpu.memory_space<vmem>>, vector<12x128xf32>
    %cst = arith.constant dense<0.000000e+00> : vector<16x128xf32>
    %2 = tpu.matmul %0, %1, %cst {dimension_numbers = #tpu.dot_dimension_numbers<[1], [0], [0], [1], [0, 0, 1, 1], [], []>} : vector<16x12xf32>, vector<12x128xf32>, vector<16x128xf32> -> vector<16x128xf32>
    %c0_3 = arith.constant 0 : index
    %c0_4 = arith.constant 0 : index
    %3 = vector.load %arg3[%c0_3, %c0_4] : memref<1x128xf32, #tpu.memory_space<vmem>>, vector<1x128xf32>
    %4 = vector.broadcast %3 : vector<1x128xf32> to vector<16x128xf32>
    %5 = arith.addf %2, %4 : vector<16x128xf32>
    %c0_5 = arith.constant 0 : index
    %c0_6 = arith.constant 0 : index
    %6 = vector.load %arg4[%c0_5, %c0_6] : memref<16x128xf32, #tpu.memory_space<vmem>>, vector<16x128xf32>
    tpu.vector_store %arg4[%c0_5, %c0_6], %5 {strides = array<i32>} : memref<16x128xf32, #tpu.memory_space<vmem>>, vector<16x128xf32>,
    return
  }
  func.func @transform_0(%arg0: i32) -> (i32, i32) {
    %c0_i32 = arith.constant 0 : i32
    %c0_i32_0 = arith.constant 0 : i32
    return %arg0, %c0_i32 : i32, i32
  }
  func.func @transform_1(%arg0: i32) -> (i32, i32) {
    %c0_i32 = arith.constant 0 : i32
    %c0_i32_0 = arith.constant 0 : i32
    %c0_i32_1 = arith.constant 0 : i32
    return %c0_i32, %c0_i32_0 : i32, i32
  }
  func.func @transform_2(%arg0: i32) -> (i32, i32) {
    %c0_i32 = arith.constant 0 : i32
    %c0_i32_0 = arith.constant 0 : i32
    %c0_i32_1 = arith.constant 0 : i32
    return %c0_i32, %c0_i32_0 : i32, i32
  }
  func.func @transform_3(%arg0: i32) -> (i32, i32) {
    %c0_i32 = arith.constant 0 : i32
    %c0_i32_0 = arith.constant 0 : i32
    return %arg0, %c0_i32 : i32, i32
  }
}

</mosaic_0001>

<bundles_post_ra>
// kernel: tpu_custom_call.1
= control target key start
LH: loop header
LB: loop body
LE: loop exit
PB: predicated region body
PF: predicated region fallthrough
CT: control target
= control target key end

     0   :  { %8 = vsyncpa [#allocation3], 0  ;;  %s246_s0 = inlined_call_operand.hbm [shape: f32[16,12], index: 0, kind: input, shape index: {}]   ;;  %s247_s1 = inlined_call_operand.hbm [shape: f32[12,128], index: 1, kind: input, shape index: {}]   ;;  %s248_s2 = inlined_call_operand.vmem [shape: f32[1,128], index: 2, kind: input, shape index: {}]   ;;  %s249_s3 = inlined_call_operand.hbm [shape: f32[16,128], index: 3, kind: output, shape index: {}]  }
   0x1   :  { %9 = vsyncpa [#allocation6], 0 }
   0x2   :  { %10 = vsyncpa [#allocation4], 0  ;;  %s15_s14 = sshll.u32 %s246_s0, 4  ;;  %s200_s15 = smov [#allocation2]   ;;  %s16_s14 = int_to_ptr.hbm [resolvable:$true] %s15_s14 }
   0x3   :  { %s17_s16 = sshll.u32 %s200_s15, 4  ;;  %s28_s19 = sshll.u32 %s247_s1, 4  ;;  %s18_s16 = int_to_ptr.vmem [resolvable:$true] %s17_s16  ;;  %s29_s19 = int_to_ptr.hbm [resolvable:$true] %s28_s19 }
   0x4   :  { %s201_s20 = smov 128   ;;  %s202_s21 = smov 8  }
   0x5   :  { %23 = dma.hbm_to_vmem [thread:$0]  %s16_s14, 256, %s18_s16, [#allocation3], %s201_s20, %s201_s20, %s202_s21  }
   0x6   :  { %s203_s22 = smov [#allocation5]  }
   0x7   :  { %s30_s23 = sshll.u32 %s203_s22, 4  ;;  %s31_s23 = int_to_ptr.vmem [resolvable:$true] %s30_s23 }
   0x8   :  { %36 = dma.hbm_to_vmem [thread:$0]  %s29_s19, 256, %s31_s23, [#allocation6], %s201_s20, %s201_s20, %s202_s21  }
   0x9   :  { %194 = dma.done.wait [#allocation3], 256  }
   0xa   :  { %195 = vsyncadd [#allocation3], 4294967040 }
   0xb   :  { %196 = dma.done.wait [#allocation6], 256  }
   0xc   :  { %197 = vsyncadd [#allocation6], 4294967040  ;;  %vm62_vm0 = vcmask 1043456   ;;  %v50_v0 = vld [vmem:[#allocation5 + $0x8] sm:$0xf]  ;;  %v49_v1 = vld [vmem:[#allocation5] sm:$0xff] }
   0xd   :  { %111 = vmatpush.msk.msra.mxu0 %vm62_vm0, %v50_v0  ;;  %114 = vmatpush.msk.msra.mxu1 %vm62_vm0, %v50_v0  ;;  %v47_v2 = vld [vmem:[#allocation2] sm:$0xff]  ;;  %vm55_vm1 = vcmask 97280   ;;  %v48_v3 = vld [vmem:[#allocation2 + $0x8] sm:$0xff]  ;;  %s204_s24 = smov [#allocation7]   ;;  %s97_s28 = sshll.u32 %s249_s3, 4  ;;  %s98_s28 = int_to_ptr.hbm [resolvable:$true] %s97_s28 }
   0xe   :  { %v121_v4 = vld [vmem:[%s248_s2] ss:$0 sm:$0xff]  ;;  %s95_s25 = sshll.u32 %s204_s24, 4  ;;  %s96_s25 = int_to_ptr.vmem [resolvable:$true] %s95_s25 }
   0xf   :  { %81 = vmatpush.msra.mxu0 %v49_v1  ;;  %115 = vmatpush.msra.mxu1 %v49_v1 }
  0x10   :  { %112 = vmatmul.msk.f32.vlgmr.msra.gmra.mxu0 %vm55_vm1, %v47_v2  ;;  %113 = vmatmul.msk.f32.vlgmr.msra.gmra.mxu1 %vm55_vm1, %v48_v3 }
  0x8d   :  { %v83_v5 = vpop.f32.mrf.mxu0  ;;  %v86_v6 = vpop.f32.mrf.mxu1 }
  0x8e   :  { %v84_v7 = vadd.f32 %v121_v4, %v83_v5  ;;  %v87_v8 = vadd.f32 %v121_v4, %v86_v6 }
  0x90   :  { %89 = vst [vmem:[#allocation7] sm:$0xff] %v84_v7 }
  0x91   :  { %90 = vst [vmem:[#allocation7 + $0x8] sm:$0xff] %v87_v8 }
  0x92   :  { %103 = dma.vmem_to_hbm [thread:$0]  %s96_s25, 256, %s98_s28, [#allocation4], %s201_s20, %s201_s20, %s202_s21  }
  0x93   :  { %198 = dma.done.wait [#allocation4], 256  }
  0x94   :  { %199 = vsyncadd [#allocation4], 4294967040 }
  0x95   :  { %108 = vsyncpa [#allocation3], 1 }
  0x96   :  { %109 = vsyncpa [#allocation6], 1 }
  0x97   :  { %110 = vsyncpa [#allocation4], 1 }

</bundles_post_ra>
